<compile_context>
chip_gen: v7x
topology: tpu7x:2x2x1
jax: 0.10.0
libtpu: 0.0.40
codegen_flags: <defaults>
</compile_context>

<pallas_src>
import functools

import jax
import jax.numpy as jnp
from jax import lax
from jax.experimental import pallas as pl
from jax.experimental.pallas import tpu as pltpu


# ----------------------------- config ---------------------------------------
class DynamicQuantConfig:
    def __init__(self, bits=4, threshold=0.35, adapt_rank=1,
                 num_power_iters=2, extra_scaling=0.5):
        self.bits = bits
        self.threshold = threshold
        self.adapt_rank = adapt_rank
        self.num_power_iters = num_power_iters
        self.extra_scaling = extra_scaling


def _vmem_budget_bytes():
    """~75% of this chip's VMEM (v5e/v6e ~96 MiB, v7x ~48 MiB); safe fallback."""
    try:
        cap = int(pltpu.get_tpu_info().vmem_capacity_bytes)
    except Exception:
        cap = 64 * 1024 * 1024            # conservative (v7x-sized) fallback
    return max(32 * 1024 * 1024, (cap * 3) // 4)


def _mask_rows(x_f32, t, tile_n, n_rows):
    """Zero out rows of the (ragged) last tile that lie past the real N."""
    valid = n_rows - t * tile_n
    mask = lax.broadcasted_iota(jnp.int32, x_f32.shape, 0) < valid
    return jnp.where(mask, x_f32, jnp.float32(0.0))


# ------------------- stats kernel A: Gram-matrix (1 pass) --------------------
def _gram_stats_kernel(x_ref, g_ref, cmax_ref, *, n_rows, tile_n, ragged):
    t = pl.program_id(0)

    @pl.when(t == 0)
    def _init():
        g_ref[...] = jnp.zeros_like(g_ref)
        cmax_ref[...] = jnp.zeros_like(cmax_ref)

    x = x_ref[...].astype(jnp.float32)
    if ragged:
        x = _mask_rows(x, t, tile_n, n_rows)

    # G += X_t^T @ X_t : full-width (D, D) MXU matmul; one HBM read of X total.
    g_ref[...] += lax.dot_general(x, x, (((0,), (0,)), ((), ())),
                                  preferred_element_type=jnp.float32)
    # Per-column abs-max of X (the LoRA-adapted colmax is derived in the
    # wrapper as cmax * |1 + a*b*es| -- exact, since the adaptation is a
    # per-column scale).
    cmax_ref[...] = jnp.maximum(cmax_ref[...],
                                jnp.max(jnp.abs(x), axis=0, keepdims=True))


# ----------- stats kernel B: streamed power iteration (large D) --------------
def _power_stats_kernel(v0_ref, x_ref, sigma_ref, frob_ref, cmax_ref,
                        v_ref, w_ref, su_ref, *,
                        num_power_iters, n_rows, tile_n, ragged):
    it = pl.program_id(0)                 # pass index: 0 .. num_power_iters
    t = pl.program_id(1)                  # row-tile index
    last_tile = pl.num_programs(1) - 1

    @pl.when(jnp.logical_and(it == 0, t == 0))
    def _init():
        v_ref[...] = v0_ref[...]
        frob_ref[...] = jnp.zeros_like(frob_ref)
        cmax_ref[...] = jnp.zeros_like(cmax_ref)

    @pl.when(t == 0)                      # reset per-pass accumulators
    def _reset_pass():
        su_ref[...] = jnp.zeros_like(su_ref)
        w_ref[...] = jnp.zeros_like(w_ref)

    x = x_ref[...].astype(jnp.float32)
    if ragged:
        x = _mask_rows(x, t, tile_n, n_rows)

    # u_t = X_t @ v : contract the lane axis of both operands (X^T never built).
    u = lax.dot_general(x, v_ref[...], (((1,), (1,)), ((), ())),
                        preferred_element_type=jnp.float32)       # (tile_n, 1)
    su_ref[...] += jnp.sum(u * u)                                 # ||X v||^2

    @pl.when(it == 0)                     # fused one-time reductions
    def _first_pass_stats():
        frob_ref[...] += jnp.sum(x * x)
        cmax_ref[...] = jnp.maximum(cmax_ref[...],
                                    jnp.max(jnp.abs(x), axis=0, keepdims=True))

    @pl.when(it < num_power_iters)
    def _accum_w():
        # VPU/sublane-reduce formulation of  w += u_t^T @ X_t  (avoids an M=1
        # MXU matmul that re-streams the whole tile for 1/256 utilization).
        w_ref[...] += jnp.sum(u * x, axis=0, keepdims=True)       # (1, D)

    @pl.when(jnp.logical_and(t == last_tile, it < num_power_iters))
    def _update_v():
        # v <- normalize(X^T normalize(X v)), normalization fixed up once per pass.
        u_norm = jnp.maximum(jnp.sqrt(su_ref[...]), jnp.float32(1e-8))
        v_s = w_ref[...] / u_norm
        v_norm = jnp.maximum(jnp.sqrt(jnp.sum(v_s * v_s)), jnp.float32(1e-8))
        v_ref[...] = v_s / v_norm

    @pl.when(jnp.logical_and(t == last_tile, it == num_power_iters))
    def _finalize():
        sigma_ref[...] = su_ref[...]      # sigma_max^2 = ||X v_final||^2


# --------------------------- quantization kernel -----------------------------
def _quant_kernel(m_ref, scale_ref, x_ref, o_ref, *, quant_min, quant_max):
    # m_ref = (1 + gate*a*b*es) / scale  (pre-folded in the wrapper); the kernel
    # is a pure streaming multiply-round-clip-multiply.
    x = x_ref[...].astype(jnp.float32)
    q = jnp.round(x * m_ref[...])
    q = jnp.clip(q, jnp.float32(quant_min), jnp.float32(quant_max))
    o_ref[...] = (q * scale_ref[0, 0]).astype(o_ref.dtype)


# ------------------ wrapper-side gate / scale computation --------------------
def _gate_and_scale(sigma_sq, frob_sq, cmax0, lora_a, lora_b, config):
    """Tiny (1, D) / scalar JAX ops on the stats outputs (hoisted out of kernels)."""
    a = lora_a.astype(jnp.float32).reshape(1, -1)
    b = lora_b.astype(jnp.float32).reshape(1, -1)
    es = jnp.float32(config.extra_scaling)
    cmax0 = cmax0.astype(jnp.float32).reshape(1, -1)

    score = sigma_sq / (frob_sq + jnp.float32(1e-8))
    adapt = score > jnp.float32(config.threshold)

    m_row = jnp.float32(1.0) + a * b * es        # x + (x*a)*b*es == x * m_row
    max_val = jnp.where(adapt,
                        jnp.max(cmax0 * jnp.abs(m_row)),
                        jnp.max(cmax0))
    qmax = jnp.float32(2 ** (config.bits - 1) - 1)
    scale = jnp.where(max_val < jnp.float32(1e-8), jnp.float32(1.0),
                      max_val / qmax)

    gate = jnp.where(adapt, jnp.float32(1.0), jnp.float32(0.0))
    m_gated = jnp.float32(1.0) + a * b * (es * gate)
    mscaled = (m_gated / scale).astype(jnp.float32)       # folded quant multiplier
    return mscaled, scale.reshape(1, 1).astype(jnp.float32)


# ------------------------------- main wrapper ---------------------------------
def dynamic_quantize(x, lora_a, lora_b, v0, config: DynamicQuantConfig, *,
                     tile_n=None, use_gram=None):
    """x: (..., hidden) float.  lora_a, lora_b, v0: (hidden,)."""
    orig_shape = x.shape
    orig_dtype = x.dtype
    D = int(orig_shape[-1])
    x_flat = x.reshape(-1, D)              # stream original dtype; no cast / pad copy
    N = int(x_flat.shape[0])

    itemsize = x_flat.dtype.itemsize
    sublane = {1: 32, 2: 16}.get(itemsize, 8)     # bf16 sublane tile is (16, 128)

    vmem_budget = _vmem_budget_bytes()
    if tile_n is None:
        # ~1/6 of the VMEM budget per (f32-equivalent) tile, up to 16 MiB, so the
        # double-buffered in+out working set stays well inside the budget.
        target_bytes = min(16 << 20, max(vmem_budget // 6, 1 << 20))
        tile_n = max(1, target_bytes // (D * 4))
    tile_n = max(sublane, (int(tile_n) // sublane) * sublane)
    if tile_n >= N:
        tile_n = N                          # single full-extent row block
    num_tiles = (N + tile_n - 1) // tile_n
    ragged = (N % tile_n) != 0              # last row tile handled by in-kernel mask

    if use_gram is None:
        # Gram path needs the (D, D) f32 accumulator resident in VMEM next to the
        # streamed tiles.  (On v5e with large D the streaming path can be faster
        # because the Gram pass turns compute-bound; callers can force use_gram=False.)
        use_gram = (D * D * 4) <= min(16 << 20, vmem_budget // 3)

    # ---------------------------- stats phase --------------------------------
    if use_gram:
        G, cmax0 = pl.pallas_call(
            functools.partial(_gram_stats_kernel,
                              n_rows=N, tile_n=tile_n, ragged=ragged),
            grid=(num_tiles,),
            in_specs=[pl.BlockSpec((tile_n, D), lambda t: (t, 0))],      # X streamed
            out_specs=(pl.BlockSpec((D, D), lambda t: (0, 0)),           # G resident
                       pl.BlockSpec((1, D), lambda t: (0, 0))),          # colmax |X|
            out_shape=(jax.ShapeDtypeStruct((D, D), jnp.float32),
                       jax.ShapeDtypeStruct((1, D), jnp.float32)),
            compiler_params=pltpu.CompilerParams(
                dimension_semantics=("arbitrary",),
                vmem_limit_bytes=vmem_budget),
        )(x_flat)
        # Everything below is O(D^2) work on the tiny Gram matrix.
        frob_sq = jnp.trace(G)
        v = v0.astype(jnp.float32)
        for _ in range(config.num_power_iters):
            w = G @ v                        # == X^T (X v); direction matches ref
            v = w / jnp.maximum(jnp.linalg.norm(w), 1e-8)
        sigma_sq = v @ (G @ v)               # == ||X v_final||^2
    else:
        v0_2d = v0.astype(jnp.float32).reshape(1, D)
        sigma_sq, frob_sq, cmax0 = pl.pallas_call(
            functools.partial(_power_stats_kernel,
                              num_power_iters=config.num_power_iters,
                              n_rows=N, tile_n=tile_n, ragged=ragged),
            grid=(config.num_power_iters + 1, num_tiles),
            in_specs=[pl.BlockSpec((1, D), lambda it, t: (0, 0)),        # v0 resident
                      pl.BlockSpec((tile_n, D), lambda it, t: (t, 0))],  # X streamed
            out_specs=(pl.BlockSpec((1, 1), lambda it, t: (0, 0)),       # sigma^2
                       pl.BlockSpec((1, 1), lambda it, t: (0, 0)),       # ||X||_F^2
                       pl.BlockSpec((1, D), lambda it, t: (0, 0))),      # colmax |X|
            out_shape=(jax.ShapeDtypeStruct((1, 1), jnp.float32),
                       jax.ShapeDtypeStruct((1, 1), jnp.float32),
                       jax.ShapeDtypeStruct((1, D), jnp.float32)),
            scratch_shapes=[pltpu.VMEM((1, D), jnp.float32),   # v
                            pltpu.VMEM((1, D), jnp.float32),   # w accumulator
                            pltpu.VMEM((1, 1), jnp.float32)],  # ||X v||^2 accumulator
            compiler_params=pltpu.CompilerParams(
                dimension_semantics=("arbitrary", "arbitrary"),
                vmem_limit_bytes=vmem_budget),
        )(v0_2d, x_flat)
        sigma_sq = sigma_sq[0, 0]
        frob_sq = frob_sq[0, 0]

    mscaled, scale = _gate_and_scale(sigma_sq, frob_sq, cmax0,
                                     lora_a, lora_b, config)

    # ---------------------------- quant phase --------------------------------
    quant_min = float(-(2 ** (config.bits - 1)))
    quant_max = float(2 ** (config.bits - 1) - 1)

    out = pl.pallas_call(
        functools.partial(_quant_kernel,
                          quant_min=quant_min, quant_max=quant_max),
        grid=(num_tiles,),
        in_specs=[pl.BlockSpec((1, D), lambda t: (0, 0)),        # folded multiplier
                  pl.BlockSpec((1, 1), lambda t: (0, 0)),        # dequant scale
                  pl.BlockSpec((tile_n, D), lambda t: (t, 0))],  # X streamed
        out_specs=pl.BlockSpec((tile_n, D), lambda t: (t, 0)),
        out_shape=jax.ShapeDtypeStruct((N, D), orig_dtype),      # unpadded, orig dtype
        compiler_params=pltpu.CompilerParams(
            dimension_semantics=("parallel",),                   # megacore-friendly
            vmem_limit_bytes=vmem_budget),
    )(mscaled, scale, x_flat)

    return out.reshape(orig_shape)


# --------------------------- pure-JAX reference -------------------------------
def _reference(x, lora_a, lora_b, v0, config):
    orig_shape = x.shape
    D = orig_shape[-1]
    X = x.reshape(-1, D).astype(jnp.float32)
    a = lora_a.astype(jnp.float32)
    b = lora_b.astype(jnp.float32)
    v = v0.astype(jnp.float32)
    for _ in range(config.num_power_iters):
        u = X @ v
        u = u / jnp.maximum(jnp.linalg.norm(u), 1e-8)
        v = X.T @ u
        v = v / jnp.maximum(jnp.linalg.norm(v), 1e-8)
    sigma_sq = jnp.sum((X @ v) ** 2)
    frob_sq = jnp.sum(X * X)
    score = sigma_sq / (frob_sq + 1e-8)
    qmax = float(2 ** (config.bits - 1) - 1)
    qmin = float(-(2 ** (config.bits - 1)))
    Xf = jnp.where(score > config.threshold,
                   X + (X * a) * b * config.extra_scaling, X)
    max_val = jnp.max(jnp.abs(Xf))
    scale = jnp.where(max_val < 1e-8, jnp.float32(1.0), max_val / qmax)
    X_int = jnp.clip(jnp.round(Xf / scale), qmin, qmax)
    return (X_int * scale).reshape(orig_shape), scale


def _ref_score(x, v0, config):
    D = x.shape[-1]
    X = x.reshape(-1, D).astype(jnp.float32)
    v = v0.astype(jnp.float32)
    for _ in range(config.num_power_iters):
        u = X @ v
        u = u / jnp.maximum(jnp.linalg.norm(u), 1e-8)
        v = X.T @ u
        v = v / jnp.maximum(jnp.linalg.norm(v), 1e-8)
    return float(jnp.sum((X @ v) ** 2) / (jnp.sum(X * X) + 1e-8))


# ------------------------------- main -----------------------------------------
if __name__ == "__main__":
    config = DynamicQuantConfig(bits=4, threshold=0.35, adapt_rank=1,
                                num_power_iters=2, extra_scaling=0.5)

    batch, seq, hidden = 2, 8, 32
    key = jax.random.PRNGKey(0)
    kx, ka, kb, kv, k1, k2, k3 = jax.random.split(key, 7)

    lora_a = 0.02 * jax.random.normal(ka, (hidden,), dtype=jnp.float32)
    lora_b = 0.02 * jax.random.normal(kb, (hidden,), dtype=jnp.float32)
    v0 = jax.random.normal(kv, (hidden,), dtype=jnp.float32)

    # Case 1: generic activations -> score < threshold (no LoRA adaptation).
    x_plain = jax.random.normal(kx, (batch, seq, hidden), dtype=jnp.float32)
    # Case 2: near-rank-1 activations -> score > threshold (LoRA branch taken).
    x_outlier = (jnp.outer(jax.random.normal(k1, (batch * seq,), dtype=jnp.float32),
                           jax.random.normal(k2, (hidden,), dtype=jnp.float32))
                 + 0.05 * jax.random.normal(k3, (batch * seq, hidden),
                                            dtype=jnp.float32)
                 ).reshape(batch, seq, hidden)
    # Case 3: ragged row count (N=14, tile_n=8 -> in-kernel last-tile masking).
    x_ragged = x_plain[:, :7, :]
    # Case 4: bf16 activations streamed as bf16, cast per tile in-kernel.
    x_bf16 = x_plain.astype(jnp.bfloat16)

    s_plain = _ref_score(x_plain, v0, config)
    s_out = _ref_score(x_outlier, v0, config)
    assert s_plain < config.threshold < s_out, (s_plain, s_out)

    cases = [
        ("gram_plain_1tile",     x_plain,   dict()),
        ("gram_outlier_2tiles",  x_outlier, dict(tile_n=8)),
        ("gram_ragged",          x_ragged,  dict(tile_n=8)),
        ("stream_plain_1tile",   x_plain,   dict(use_gram=False)),
        ("stream_plain_2tiles",  x_plain,   dict(tile_n=8, use_gram=False)),
        ("stream_outlier_2tile", x_outlier, dict(tile_n=8, use_gram=False)),
        ("stream_ragged",        x_ragged,  dict(tile_n=8, use_gram=False)),
        ("gram_bf16",            x_bf16,    dict()),
    ]
    for name, xin, kwargs in cases:
        out = jax.block_until_ready(
            dynamic_quantize(xin, lora_a, lora_b, v0, config, **kwargs))
        assert out.shape == xin.shape and out.dtype == xin.dtype, name
        ref, ref_scale = _reference(xin, lora_a, lora_b, v0, config)
        level = float(ref_scale)
        exact_tol = 2e-2 if out.dtype == jnp.bfloat16 else 1e-4
        diff = jnp.abs(out.astype(jnp.float32) - ref.astype(jnp.float32))
        # Quantization-aware check: essentially exact everywhere, and never off by
        # more than one quantization level (guards against a benign fp-order
        # difference flipping a round() exactly at a .5 boundary).
        max_diff = float(jnp.max(diff))
        assert max_diff <= 1.01 * level + exact_tol, (name, max_diff, level)
        frac_exact = float(jnp.mean((diff <= exact_tol).astype(jnp.float32)))
        assert frac_exact >= 0.98, (name, frac_exact)

    print("KERNEL_OK")
</pallas_src>

<mosaic_0001>
module attributes {stable_mosaic.version = 11 : i64} {
  func.func @_gram_stats_kernel(%arg0: i32, %arg1: memref<16x32xf32, #tpu.memory_space<vmem>>, %arg2: memref<32x32xf32, #tpu.memory_space<vmem>>, %arg3: memref<1x32xf32, #tpu.memory_space<vmem>>) attributes {dimension_semantics = [#tpu.dimension_semantics<arbitrary>], iteration_bounds = array<i64: 1>, scalar_prefetch = 0 : i64, scratch_operands = 0 : i64, tpu.core_type = #tpu.core_type<tc>, window_params = [{transform_indices = @transform_0, window_bounds = array<i64: 16, 32>}, {pipeline_mode = #tpu.pipeline_mode<synchronous>, transform_indices = @transform_1, window_bounds = array<i64: 32, 32>}, {pipeline_mode = #tpu.pipeline_mode<synchronous>, transform_indices = @transform_2, window_bounds = array<i64: 1, 32>}]} {
    %c0_i32 = arith.constant 0 : i32
    %0 = arith.cmpi eq, %arg0, %c0_i32 : i32
    %1 = arith.extui %0 : i1 to i32
    %c0_i32_0 = arith.constant 0 : i32
    %2 = arith.cmpi ne, %1, %c0_i32_0 : i32
    scf.if %2 {
      %cst_11 = arith.constant 0.000000e+00 : f32
      %14 = vector.broadcast %cst_11 : f32 to vector<32x32xf32>
      %c0_12 = arith.constant 0 : index
      %c0_13 = arith.constant 0 : index
      %15 = vector.load %arg2[%c0_12, %c0_13] : memref<32x32xf32, #tpu.memory_space<vmem>>, vector<32x32xf32>
      tpu.vector_store %arg2[%c0_12, %c0_13], %14 {strides = array<i32>} : memref<32x32xf32, #tpu.memory_space<vmem>>, vector<32x32xf32>,
      %cst_14 = arith.constant 0.000000e+00 : f32
      %16 = vector.broadcast %cst_14 : f32 to vector<1x32xf32>
      %c0_15 = arith.constant 0 : index
      %c0_16 = arith.constant 0 : index
      %17 = vector.load %arg3[%c0_15, %c0_16] : memref<1x32xf32, #tpu.memory_space<vmem>>, vector<1x32xf32>
      tpu.vector_store %arg3[%c0_15, %c0_16], %16 {strides = array<i32>} : memref<1x32xf32, #tpu.memory_space<vmem>>, vector<1x32xf32>,
    } else {
    }
    %c0 = arith.constant 0 : index
    %c0_1 = arith.constant 0 : index
    %3 = vector.load %arg1[%c0, %c0_1] : memref<16x32xf32, #tpu.memory_space<vmem>>, vector<16x32xf32>
    %c0_2 = arith.constant 0 : index
    %c0_3 = arith.constant 0 : index
    %4 = vector.load %arg2[%c0_2, %c0_3] : memref<32x32xf32, #tpu.memory_space<vmem>>, vector<32x32xf32>
    %cst = arith.constant dense<0.000000e+00> : vector<32x32xf32>
    %5 = tpu.matmul %3, %3, %cst {dimension_numbers = #tpu.dot_dimension_numbers<[0], [0], [1], [1], [0, 1, 1, 1], [], []>} : vector<16x32xf32>, vector<16x32xf32>, vector<32x32xf32> -> vector<32x32xf32>
    %6 = arith.addf %4, %5 : vector<32x32xf32>
    %c0_4 = arith.constant 0 : index
    %c0_5 = arith.constant 0 : index
    %7 = vector.load %arg2[%c0_4, %c0_5] : memref<32x32xf32, #tpu.memory_space<vmem>>, vector<32x32xf32>
    tpu.vector_store %arg2[%c0_4, %c0_5], %6 {strides = array<i32>} : memref<32x32xf32, #tpu.memory_space<vmem>>, vector<32x32xf32>,
    %c0_6 = arith.constant 0 : index
    %c0_7 = arith.constant 0 : index
    %8 = vector.load %arg3[%c0_6, %c0_7] : memref<1x32xf32, #tpu.memory_space<vmem>>, vector<1x32xf32>
    %9 = math.absf %3 : vector<16x32xf32>
    %cst_8 = arith.constant dense<0xFF800000> : vector<32xf32>
    %10 = vector.multi_reduction <maximumf>, %9, %cst_8 [0] : vector<16x32xf32> to vector<32xf32>
    %11 = vector.shape_cast %10 : vector<32xf32> to vector<1x32xf32>
    %12 = arith.maximumf %8, %11 : vector<1x32xf32>
    %c0_9 = arith.constant 0 : index
    %c0_10 = arith.constant 0 : index
    %13 = vector.load %arg3[%c0_9, %c0_10] : memref<1x32xf32, #tpu.memory_space<vmem>>, vector<1x32xf32>
    tpu.vector_store %arg3[%c0_9, %c0_10], %12 {strides = array<i32>} : memref<1x32xf32, #tpu.memory_space<vmem>>, vector<1x32xf32>,
    return
  }
  func.func @transform_0(%arg0: i32) -> (i32, i32) {
    %c0_i32 = arith.constant 0 : i32
    %c0_i32_0 = arith.constant 0 : i32
    return %arg0, %c0_i32 : i32, i32
  }
  func.func @transform_1(%arg0: i32) -> (i32, i32) {
    %c0_i32 = arith.constant 0 : i32
    %c0_i32_0 = arith.constant 0 : i32
    %c0_i32_1 = arith.constant 0 : i32
    return %c0_i32, %c0_i32_0 : i32, i32
  }
  func.func @transform_2(%arg0: i32) -> (i32, i32) {
    %c0_i32 = arith.constant 0 : i32
    %c0_i32_0 = arith.constant 0 : i32
    %c0_i32_1 = arith.constant 0 : i32
    return %c0_i32, %c0_i32_0 : i32, i32
  }
}

</mosaic_0001>

<bundles_post_ra>
// kernel: tpu_custom_call.1
= control target key start
LH: loop header
LB: loop body
LE: loop exit
PB: predicated region body
PF: predicated region fallthrough
CT: control target
= control target key end

     0   :  { %8 = vsyncpa [#allocation3], 0  ;;  %s405_s0 = inlined_call_operand.hbm [shape: f32[16,32], index: 0, kind: input, shape index: {}]   ;;  %s406_s1 = inlined_call_operand.hbm [shape: f32[32,32], index: 1, kind: output, shape index: {0}]   ;;  %s407_s2 = inlined_call_operand.hbm [shape: f32[1,32], index: 2, kind: output, shape index: {1}]  }
   0x1   :  { %9 = vsyncpa [#allocation4], 0 }
   0x2   :  { %10 = vsyncpa [#allocation7], 0  ;;  %s332_s9 = smov [#allocation2]   ;;  %s260_s13 = scalar_lea.hbm %s405_s0, 256 }
   0x3   :  { %s16_s10 = sshll.u32 %s332_s9, 4  ;;  %p261_p0 = scmp.ne.s32.totalorder %s405_s0, %s260_s13  ;;  %s17_s10 = int_to_ptr.vmem [resolvable:$true] %s16_s10 }
   0x4   :  { %p264_p1 = scmp.lt.u32.totalorder %s260_s13, %s405_s0 }
   0x6   :  { %p266_p2 = pnand %p264_p1, %p261_p0 }
   0x8   :  { %269 = shalt.err (!%p266_p2)
}
   0x9   :  { %s270_s18 = scalar_lea.vmem %s17_s10, 256  ;;  %p275_p4 = scmp.lt.s32.totalorder %s17_s10, %s17_s10 }
   0xa   :  { %p271_p3 = scmp.ne.s32.totalorder %s17_s10, %s270_s18  ;;  %p276_p5 = scmp.lt.s32.totalorder %s270_s18, %s270_s18 }
   0xc   :  { %p277_p6 = por %p276_p5, %p275_p4 }
   0xe   :  { %p278_p7 = pnand %p277_p6, %p271_p3 }
  0x10   :  { %281 = shalt.err (!%p278_p7)
}
  0x11   :  { %s333_s19 = smov 128   ;;  %s334_s20 = smov 8  }
  0x12   :  { %22 = dma.hbm_to_vmem [thread:$0]  %s405_s0, 256, %s17_s10, [#allocation3], %s333_s19, %s333_s19, %s334_s20  }
  0x13   :  { %326 = dma.done.wait [#allocation3], 256  }
  0x14   :  { %327 = vsyncadd [#allocation3], 4294967040  ;;  %v37_v0 = vld [vmem:[#allocation2] sm:$0xff]  ;;  %v38_v1 = vld [vmem:[#allocation2 + $0x8] sm:$0xff]  ;;  %vm30_vm0 = vcmask 261120   ;;  %v335_v8 = vmov 0.0  }
  0x15   :  { %43 = vxpose.xlu0.b32.start [1/2] (short) (narrow) %v37_v0, 32  ;;  %v183_v2 = vand.u32 2147483647, %v37_v0  ;;  %v184_v3 = vand.u32 2147483647, %v38_v1  ;;  %v248_v4 = vpack.c.bf16 %v38_v1, %v37_v0  ;;  %32 = vst.msk [vmem:[#allocation5 + $0x8] sm:$0xff] %vm30_vm0, %v335_v8 }
  0x16   :  { %31 = vst.msk [vmem:[#allocation5] sm:$0xff] %vm30_vm0, %v335_v8  ;;  %33 = vst.msk [vmem:[#allocation5 + $0x10] sm:$0xff] %vm30_vm0, %v335_v8  ;;  %vm75_vm1 = vcmask 130048   ;;  %vm35_vm2 = vcmask 253952   ;;  %s336_s0 = smov [#allocation6]  }
  0x17   :  { %v185_v5 = vsel %vm30_vm0, %v183_v2, -inf  ;;  %v186_v6 = vsel %vm30_vm0, %v184_v3, -inf  ;;  %249 = vmatprep.subr.bf16.mxu0 %v248_v4  ;;  %252 = vmatprep.subr.bf16.mxu1 %v248_v4  ;;  %34 = vst.msk [vmem:[#allocation5 + $0x18] sm:$0xff] %vm30_vm0, %v335_v8  ;;  %s215_s23 = sshll.u32 %s336_s0, 4  ;;  %s216_s23 = int_to_ptr.vmem [resolvable:$true] %s215_s23 }
  0x18   :  { %v187_v7 = vmax.f32 %v185_v5, %v186_v6  ;;  %251 = vmatpush3.bf16.msra.mxu0 %v248_v4  ;;  %253 = vmatpush3.bf16.msra.mxu1 %v248_v4  ;;  %36 = vst.msk [vmem:[#allocation6] sm:$0x1] %vm35_vm2, %v335_v8  ;;  %s282_s24 = scalar_lea.vmem %s216_s23, 16  ;;  %s286_s25 = scalar_lea.vmem %s216_s23, 32 }
  0x19   :  { %44 = vxpose.xlu0.b32.end [2/2] (short) (narrow) %v38_v1, 32  ;;  %p283_p8 = scmp.ne.s32.totalorder %s216_s23, %s282_s24  ;;  %p287_p9 = scmp.lt.s32.totalorder %s216_s23, %s216_s23 }
  0x1a   :  { %v188_v13 = vrot.slane %v187_v7, 4  ;;  %p288_p10 = scmp.lt.s32.totalorder %s286_s25, %s282_s24 }
  0x1c   :  { %v189_v14 = vmax.f32 %v187_v7, %v188_v13  ;;  %p289_p11 = por %p288_p10, %p287_p9 }
  0x1e   :  { %v190_v15 = vrot.slane %v189_v14, 2  ;;  %p290_p12 = pnand %p289_p11, %p283_p8 }
  0x1f   :  { %v182_v19 = vld [vmem:[#allocation6] sm:$0x1] }
  0x20   :  { %v191_v16 = vmax.f32 %v189_v14, %v190_v15 }
  0x22   :  { %v192_v17 = vrot.slane %v191_v16, 1 }
  0x24   :  { %v193_v18 = vmax.f32 %v191_v16, %v192_v17 }
  0x26   :  { %v194_v20 = vmax.f32 %v182_v19, %v193_v18 }
  0x28   :  { %196 = vst.msk [vmem:[#allocation6] sm:$0x1] %vm35_vm2, %v194_v20 }
  0x95   :  { %v59_v9 = vpop.trf.xlu0 }
  0x96   :  { %242 = vmatprep.mubr.msk.f32.mxu0 %vm75_vm1, %v59_v9 }
  0x99   :  { %v60_v10 = vpop.trf.xlu0 }
  0x9a   :  { %243 = vmatmul.mubr.msk.f32.vlgmr.msra.gmra.mrb[0].mxu0 %vm75_vm1, %v60_v10 }
  0x9d   :  { %v61_v11 = vpop.trf.xlu0 }
  0x9e   :  { %245 = vmatprep.mubr.msk.f32.mxu1 %vm75_vm1, %v61_v11 }
  0xa1   :  { %v62_v12 = vpop.trf.xlu0 }
  0xa2   :  { %246 = vmatmul.mubr.msk.f32.vlgmr.msra.gmra.mrb[0].mxu1 %vm75_vm1, %v62_v12 }
  0xa3   :  { %293 = shalt.err (!%p290_p12)
}
  0xa4   :  { %s294_s28 = scalar_lea.hbm %s407_s2, 16 }
  0xa5   :  { %p295_p13 = scmp.ne.s32.totalorder %s407_s2, %s294_s28  ;;  %p298_p0 = scmp.lt.u32.totalorder %s294_s28, %s407_s2 }
  0xa7   :  { %p300_p1 = pnand %p298_p0, %p295_p13 }
  0xa9   :  { %303 = shalt.err (!%p300_p1)
}
  0xaa   :  { %218 = dma.vmem_to_hbm [thread:$0]  %s216_s23, 16, %s407_s2, [#allocation7]   ;;  %v40_v21 = vld [vmem:[#allocation5 + $0x8] sm:$0xff]  ;;  %v39_v22 = vld [vmem:[#allocation5] sm:$0xff]  ;;  %v42_v27 = vld [vmem:[#allocation5 + $0x18] sm:$0xff] }
  0xab   :  { %v41_v28 = vld [vmem:[#allocation5 + $0x10] sm:$0xff]  ;;  %s337_s7 = smov [#allocation5]  }
  0xac   :  { %s202_s8 = sshll.u32 %s337_s7, 4  ;;  %s203_s8 = int_to_ptr.vmem [resolvable:$true] %s202_s8 }
  0xad   :  { %s304_s2 = scalar_lea.vmem %s203_s8, 512  ;;  %p309_p3 = scmp.lt.s32.totalorder %s203_s8, %s203_s8 }
  0xae   :  { %p305_p2 = scmp.ne.s32.totalorder %s203_s8, %s304_s2  ;;  %p310_p4 = scmp.lt.s32.totalorder %s304_s2, %s304_s2 }
  0xb0   :  { %p311_p5 = por %p310_p4, %p309_p3 }
  0xb2   :  { %p312_p6 = pnand %p311_p5, %p305_p2 }
 0x16d   :  { %v244_v23 = vpop.f32.mrb[0].mxu0 }
 0x16e   :  { %v174_v24 = vadd.f32 %v244_v23, %v40_v21  ;;  %v154_v25 = vpop.f32.mrb[1].mxu0 }
 0x16f   :  { %v173_v26 = vadd.f32 %v154_v25, %v39_v22 }
 0x170   :  { %179 = vst.msk [vmem:[#allocation5 + $0x8] sm:$0xff] %vm30_vm0, %v174_v24 }
 0x171   :  { %178 = vst.msk [vmem:[#allocation5] sm:$0xff] %vm30_vm0, %v173_v26 }
 0x175   :  { %v247_v29 = vpop.f32.mrb[0].mxu1 }
 0x176   :  { %v176_v30 = vadd.f32 %v247_v29, %v42_v27  ;;  %v164_v31 = vpop.f32.mrb[1].mxu1 }
 0x177   :  { %v175_v32 = vadd.f32 %v164_v31, %v41_v28 }
 0x178   :  { %181 = vst.msk [vmem:[#allocation5 + $0x18] sm:$0xff] %vm30_vm0, %v176_v30 }
 0x179   :  { %180 = vst.msk [vmem:[#allocation5 + $0x10] sm:$0xff] %vm30_vm0, %v175_v32 }
 0x17a   :  { %315 = shalt.err (!%p312_p6)
}
 0x17b   :  { %s316_s11 = scalar_lea.hbm %s406_s1, 512 }
 0x17c   :  { %p317_p7 = scmp.ne.s32.totalorder %s406_s1, %s316_s11  ;;  %p320_p8 = scmp.lt.u32.totalorder %s316_s11, %s406_s1 }
 0x17e   :  { %p322_p9 = pnand %p320_p8, %p317_p7 }
 0x180   :  { %325 = shalt.err (!%p322_p9)
}
 0x181   :  { %208 = dma.vmem_to_hbm [thread:$0]  %s203_s8, 512, %s406_s1, [#allocation4], %s333_s19, %s333_s19, %s334_s20  }
 0x182   :  { %328 = dma.done.wait [#allocation4], 512  }
 0x183   :  { %329 = vsyncadd [#allocation4], 4294966784 }
 0x184   :  { %330 = dma.done.wait [#allocation7], 16  }
 0x185   :  { %331 = vsyncadd [#allocation7], 4294967280 }
 0x186   :  { %225 = vsyncpa [#allocation3], 1 }
 0x187   :  { %226 = vsyncpa [#allocation4], 1 }
 0x188   :  { %227 = vsyncpa [#allocation7], 1 }

</bundles_post_ra>
